<compile_context>
chip_gen: v7x
topology: tpu7x:2x2x1
jax: 0.10.0
libtpu: 0.0.40
codegen_flags: <defaults>
</compile_context>

<pallas_src>
import jax
import jax.numpy as jnp
from jax import lax
from jax.experimental import pallas as pl
from jax.experimental.pallas import tpu as pltpu


def _embedding_kernel(idx_ref, w_ref, o_ref):
    """idx_ref: SMEM (N_pad,) int32; w_ref: VMEM (V, D); o_ref: VMEM (TILE_T, D)."""
    tile_t = o_ref.shape[0]
    base = pl.multiple_of(pl.program_id(0) * tile_t, tile_t)

    def body(t, carry):
        row = idx_ref[base + t]                           # cheap SMEM scalar read
        o_ref[pl.ds(t, 1), :] = w_ref[pl.ds(row, 1), :]   # dynamic sublane row copy
        return carry

    # Static trip count; unroll short loops so the scheduler overlaps the
    # per-row loads/stores (longer tiles keep a rolled loop to bound code size).
    lax.fori_loop(0, tile_t, body, 0, unroll=(tile_t <= 64))


def _choose_tile(n_tokens):
    # Prefer the largest token tile that does not exceed the token count;
    # 8-row minimum keeps the output block (8, 128)-aligned.
    for t in (512, 256, 128, 64, 32, 16, 8):
        if n_tokens >= t:
            return t
    return 8


def embedding(weight, idx, *, tile_tokens=None):
    """weight: (V, D) float array, idx: int array of any shape -> (*idx.shape, D)."""
    V, D = weight.shape
    # TODO(synk): for vocab tables too large for VMEM (> ~16-32 MiB) or very
    # long index streams (> SMEM capacity), switch to a manual HBM DMA gather
    # (memory_space=pl.ANY + make_async_copy per row) instead of a resident
    # table + fully prefetched index vector.
    out_batch_shape = idx.shape
    flat = idx.reshape(-1).astype(jnp.int32)
    n = flat.shape[0]
    tile_t = tile_tokens or _choose_tile(n)
    n_pad = pl.cdiv(n, tile_t) * tile_t
    if n_pad != n:
        flat = jnp.pad(flat, (0, n_pad - n))

    out = pl.pallas_call(
        _embedding_kernel,
        out_shape=jax.ShapeDtypeStruct((n_pad, D), weight.dtype),
        grid_spec=pltpu.PrefetchScalarGridSpec(
            num_scalar_prefetch=1,                        # flat token ids -> SMEM
            grid=(n_pad // tile_t,),
            in_specs=[
                # Full table, constant block index -> DMA'd once, VMEM-resident.
                pl.BlockSpec((V, D), lambda i, ids: (0, 0)),
            ],
            # Lane-dense output tiles (TILE_T multiple of 8, full D last dim),
            # auto double-buffered across the grid.
            out_specs=pl.BlockSpec((tile_t, D), lambda i, ids: (i, 0)),
        ),
        compiler_params=pltpu.CompilerParams(
            dimension_semantics=("parallel",),
        ),
    )(flat, weight)

    if n_pad != n:
        out = out[:n]
    return out.reshape(*out_batch_shape, D)


if __name__ == "__main__":
    key = jax.random.PRNGKey(0)
    k_w, k_idx = jax.random.split(key)

    num_tokens, dim = 64, 128          # lane-dense hidden dim (multiple of 128)
    B, S = 2, 16                       # 32 flat tokens -> 2 grid tiles of 16
    weight = jax.random.normal(k_w, (num_tokens, dim), dtype=jnp.float32)
    Y = jax.random.randint(k_idx, (B, S), 0, num_tokens, dtype=jnp.int32)

    out = embedding(weight, Y)
    out = jax.block_until_ready(out)

    ref = weight[Y]                    # pure-JAX reference of the PyTorch forward
    assert out.shape == (B, S, dim) and out.dtype == weight.dtype
    assert jnp.array_equal(out, ref), "mismatch vs reference"
    print("KERNEL_OK")
</pallas_src>

<mosaic_0001>
module attributes {stable_mosaic.version = 11 : i64} {
  func.func @_embedding_kernel(%arg0: i32, %arg1: memref<32xi32, #tpu.memory_space<smem>>, %arg2: memref<64x128xf32, #tpu.memory_space<vmem>>, %arg3: memref<32x128xf32, #tpu.memory_space<vmem>>) attributes {dimension_semantics = [#tpu.dimension_semantics<parallel>], iteration_bounds = array<i64: 1>, scalar_prefetch = 1 : i64, scratch_operands = 0 : i64, tpu.core_type = #tpu.core_type<tc>, window_params = [{pipeline_mode = #tpu.pipeline_mode<synchronous>, transform_indices = @transform_0, window_bounds = array<i64: 64, 128>}, {transform_indices = @transform_1, window_bounds = array<i64: 32, 128>}]} {
    %c32_i32 = arith.constant 32 : i32
    %0 = arith.muli %arg0, %c32_i32 : i32
    %1 = tpu.assume_multiple %0, 32 : i32
    %c0_i32 = arith.constant 0 : i32
    %2 = arith.addi %1, %c0_i32 : i32
    %3 = arith.index_cast %2 : i32 to index
    %4 = memref.load %arg1[%3] : memref<32xi32, #tpu.memory_space<smem>>
    %5 = arith.index_cast %4 : i32 to index
    %c0 = arith.constant 0 : index
    %6 = vector.load %arg2[%5, %c0] : memref<64x128xf32, #tpu.memory_space<vmem>>, vector<1x128xf32>
    %7 = arith.index_cast %c0_i32 : i32 to index
    %c0_0 = arith.constant 0 : index
    %8 = vector.load %arg3[%7, %c0_0] : memref<32x128xf32, #tpu.memory_space<vmem>>, vector<1x128xf32>
    tpu.vector_store %arg3[%7, %c0_0], %6 {strides = array<i32>} : memref<32x128xf32, #tpu.memory_space<vmem>>, vector<1x128xf32>,
    %c1_i32 = arith.constant 1 : i32
    %9 = arith.addi %1, %c1_i32 : i32
    %10 = arith.index_cast %9 : i32 to index
    %11 = memref.load %arg1[%10] : memref<32xi32, #tpu.memory_space<smem>>
    %12 = arith.index_cast %11 : i32 to index
    %c0_1 = arith.constant 0 : index
    %13 = vector.load %arg2[%12, %c0_1] : memref<64x128xf32, #tpu.memory_space<vmem>>, vector<1x128xf32>
    %14 = arith.index_cast %c1_i32 : i32 to index
    %c0_2 = arith.constant 0 : index
    %15 = vector.load %arg3[%14, %c0_2] : memref<32x128xf32, #tpu.memory_space<vmem>>, vector<1x128xf32>
    tpu.vector_store %arg3[%14, %c0_2], %13 {strides = array<i32>} : memref<32x128xf32, #tpu.memory_space<vmem>>, vector<1x128xf32>,
    %c2_i32 = arith.constant 2 : i32
    %16 = arith.addi %1, %c2_i32 : i32
    %17 = arith.index_cast %16 : i32 to index
    %18 = memref.load %arg1[%17] : memref<32xi32, #tpu.memory_space<smem>>
    %19 = arith.index_cast %18 : i32 to index
    %c0_3 = arith.constant 0 : index
    %20 = vector.load %arg2[%19, %c0_3] : memref<64x128xf32, #tpu.memory_space<vmem>>, vector<1x128xf32>
    %21 = arith.index_cast %c2_i32 : i32 to index
    %c0_4 = arith.constant 0 : index
    %22 = vector.load %arg3[%21, %c0_4] : memref<32x128xf32, #tpu.memory_space<vmem>>, vector<1x128xf32>
    tpu.vector_store %arg3[%21, %c0_4], %20 {strides = array<i32>} : memref<32x128xf32, #tpu.memory_space<vmem>>, vector<1x128xf32>,
    %c3_i32 = arith.constant 3 : i32
    %23 = arith.addi %1, %c3_i32 : i32
    %24 = arith.index_cast %23 : i32 to index
    %25 = memref.load %arg1[%24] : memref<32xi32, #tpu.memory_space<smem>>
    %26 = arith.index_cast %25 : i32 to index
    %c0_5 = arith.constant 0 : index
    %27 = vector.load %arg2[%26, %c0_5] : memref<64x128xf32, #tpu.memory_space<vmem>>, vector<1x128xf32>
    %28 = arith.index_cast %c3_i32 : i32 to index
    %c0_6 = arith.constant 0 : index
    %29 = vector.load %arg3[%28, %c0_6] : memref<32x128xf32, #tpu.memory_space<vmem>>, vector<1x128xf32>
    tpu.vector_store %arg3[%28, %c0_6], %27 {strides = array<i32>} : memref<32x128xf32, #tpu.memory_space<vmem>>, vector<1x128xf32>,
    %c4_i32 = arith.constant 4 : i32
    %30 = arith.addi %1, %c4_i32 : i32
    %31 = arith.index_cast %30 : i32 to index
    %32 = memref.load %arg1[%31] : memref<32xi32, #tpu.memory_space<smem>>
    %33 = arith.index_cast %32 : i32 to index
    %c0_7 = arith.constant 0 : index
    %34 = vector.load %arg2[%33, %c0_7] : memref<64x128xf32, #tpu.memory_space<vmem>>, vector<1x128xf32>
    %35 = arith.index_cast %c4_i32 : i32 to index
    %c0_8 = arith.constant 0 : index
    %36 = vector.load %arg3[%35, %c0_8] : memref<32x128xf32, #tpu.memory_space<vmem>>, vector<1x128xf32>
    tpu.vector_store %arg3[%35, %c0_8], %34 {strides = array<i32>} : memref<32x128xf32, #tpu.memory_space<vmem>>, vector<1x128xf32>,
    %c5_i32 = arith.constant 5 : i32
    %37 = arith.addi %1, %c5_i32 : i32
    %38 = arith.index_cast %37 : i32 to index
    %39 = memref.load %arg1[%38] : memref<32xi32, #tpu.memory_space<smem>>
    %40 = arith.index_cast %39 : i32 to index
    %c0_9 = arith.constant 0 : index
    %41 = vector.load %arg2[%40, %c0_9] : memref<64x128xf32, #tpu.memory_space<vmem>>, vector<1x128xf32>
    %42 = arith.index_cast %c5_i32 : i32 to index
    %c0_10 = arith.constant 0 : index
    %43 = vector.load %arg3[%42, %c0_10] : memref<32x128xf32, #tpu.memory_space<vmem>>, vector<1x128xf32>
    tpu.vector_store %arg3[%42, %c0_10], %41 {strides = array<i32>} : memref<32x128xf32, #tpu.memory_space<vmem>>, vector<1x128xf32>,
    %c6_i32 = arith.constant 6 : i32
    %44 = arith.addi %1, %c6_i32 : i32
    %45 = arith.index_cast %44 : i32 to index
    %46 = memref.load %arg1[%45] : memref<32xi32, #tpu.memory_space<smem>>
    %47 = arith.index_cast %46 : i32 to index
    %c0_11 = arith.constant 0 : index
    %48 = vector.load %arg2[%47, %c0_11] : memref<64x128xf32, #tpu.memory_space<vmem>>, vector<1x128xf32>
    %49 = arith.index_cast %c6_i32 : i32 to index
    %c0_12 = arith.constant 0 : index
    %50 = vector.load %arg3[%49, %c0_12] : memref<32x128xf32, #tpu.memory_space<vmem>>, vector<1x128xf32>
    tpu.vector_store %arg3[%49, %c0_12], %48 {strides = array<i32>} : memref<32x128xf32, #tpu.memory_space<vmem>>, vector<1x128xf32>,
    %c7_i32 = arith.constant 7 : i32
    %51 = arith.addi %1, %c7_i32 : i32
    %52 = arith.index_cast %51 : i32 to index
    %53 = memref.load %arg1[%52] : memref<32xi32, #tpu.memory_space<smem>>
    %54 = arith.index_cast %53 : i32 to index
    %c0_13 = arith.constant 0 : index
    %55 = vector.load %arg2[%54, %c0_13] : memref<64x128xf32, #tpu.memory_space<vmem>>, vector<1x128xf32>
    %56 = arith.index_cast %c7_i32 : i32 to index
    %c0_14 = arith.constant 0 : index
    %57 = vector.load %arg3[%56, %c0_14] : memref<32x128xf32, #tpu.memory_space<vmem>>, vector<1x128xf32>
    tpu.vector_store %arg3[%56, %c0_14], %55 {strides = array<i32>} : memref<32x128xf32, #tpu.memory_space<vmem>>, vector<1x128xf32>,
    %c8_i32 = arith.constant 8 : i32
    %58 = arith.addi %1, %c8_i32 : i32
    %59 = arith.index_cast %58 : i32 to index
    %60 = memref.load %arg1[%59] : memref<32xi32, #tpu.memory_space<smem>>
    %61 = arith.index_cast %60 : i32 to index
    %c0_15 = arith.constant 0 : index
    %62 = vector.load %arg2[%61, %c0_15] : memref<64x128xf32, #tpu.memory_space<vmem>>, vector<1x128xf32>
    %63 = arith.index_cast %c8_i32 : i32 to index
    %c0_16 = arith.constant 0 : index
    %64 = vector.load %arg3[%63, %c0_16] : memref<32x128xf32, #tpu.memory_space<vmem>>, vector<1x128xf32>
    tpu.vector_store %arg3[%63, %c0_16], %62 {strides = array<i32>} : memref<32x128xf32, #tpu.memory_space<vmem>>, vector<1x128xf32>,
    %c9_i32 = arith.constant 9 : i32
    %65 = arith.addi %1, %c9_i32 : i32
    %66 = arith.index_cast %65 : i32 to index
    %67 = memref.load %arg1[%66] : memref<32xi32, #tpu.memory_space<smem>>
    %68 = arith.index_cast %67 : i32 to index
    %c0_17 = arith.constant 0 : index
    %69 = vector.load %arg2[%68, %c0_17] : memref<64x128xf32, #tpu.memory_space<vmem>>, vector<1x128xf32>
    %70 = arith.index_cast %c9_i32 : i32 to index
    %c0_18 = arith.constant 0 : index
    %71 = vector.load %arg3[%70, %c0_18] : memref<32x128xf32, #tpu.memory_space<vmem>>, vector<1x128xf32>
    tpu.vector_store %arg3[%70, %c0_18], %69 {strides = array<i32>} : memref<32x128xf32, #tpu.memory_space<vmem>>, vector<1x128xf32>,
    %c10_i32 = arith.constant 10 : i32
    %72 = arith.addi %1, %c10_i32 : i32
    %73 = arith.index_cast %72 : i32 to index
    %74 = memref.load %arg1[%73] : memref<32xi32, #tpu.memory_space<smem>>
    %75 = arith.index_cast %74 : i32 to index
    %c0_19 = arith.constant 0 : index
    %76 = vector.load %arg2[%75, %c0_19] : memref<64x128xf32, #tpu.memory_space<vmem>>, vector<1x128xf32>
    %77 = arith.index_cast %c10_i32 : i32 to index
    %c0_20 = arith.constant 0 : index
    %78 = vector.load %arg3[%77, %c0_20] : memref<32x128xf32, #tpu.memory_space<vmem>>, vector<1x128xf32>
    tpu.vector_store %arg3[%77, %c0_20], %76 {strides = array<i32>} : memref<32x128xf32, #tpu.memory_space<vmem>>, vector<1x128xf32>,
    %c11_i32 = arith.constant 11 : i32
    %79 = arith.addi %1, %c11_i32 : i32
    %80 = arith.index_cast %79 : i32 to index
    %81 = memref.load %arg1[%80] : memref<32xi32, #tpu.memory_space<smem>>
    %82 = arith.index_cast %81 : i32 to index
    %c0_21 = arith.constant 0 : index
    %83 = vector.load %arg2[%82, %c0_21] : memref<64x128xf32, #tpu.memory_space<vmem>>, vector<1x128xf32>
    %84 = arith.index_cast %c11_i32 : i32 to index
    %c0_22 = arith.constant 0 : index
    %85 = vector.load %arg3[%84, %c0_22] : memref<32x128xf32, #tpu.memory_space<vmem>>, vector<1x128xf32>
    tpu.vector_store %arg3[%84, %c0_22], %83 {strides = array<i32>} : memref<32x128xf32, #tpu.memory_space<vmem>>, vector<1x128xf32>,
    %c12_i32 = arith.constant 12 : i32
    %86 = arith.addi %1, %c12_i32 : i32
    %87 = arith.index_cast %86 : i32 to index
    %88 = memref.load %arg1[%87] : memref<32xi32, #tpu.memory_space<smem>>
    %89 = arith.index_cast %88 : i32 to index
    %c0_23 = arith.constant 0 : index
    %90 = vector.load %arg2[%89, %c0_23] : memref<64x128xf32, #tpu.memory_space<vmem>>, vector<1x128xf32>
    %91 = arith.index_cast %c12_i32 : i32 to index
    %c0_24 = arith.constant 0 : index
    %92 = vector.load %arg3[%91, %c0_24] : memref<32x128xf32, #tpu.memory_space<vmem>>, vector<1x128xf32>
    tpu.vector_store %arg3[%91, %c0_24], %90 {strides = array<i32>} : memref<32x128xf32, #tpu.memory_space<vmem>>, vector<1x128xf32>,
    %c13_i32 = arith.constant 13 : i32
    %93 = arith.addi %1, %c13_i32 : i32
    %94 = arith.index_cast %93 : i32 to index
    %95 = memref.load %arg1[%94] : memref<32xi32, #tpu.memory_space<smem>>
    %96 = arith.index_cast %95 : i32 to index
    %c0_25 = arith.constant 0 : index
    %97 = vector.load %arg2[%96, %c0_25] : memref<64x128xf32, #tpu.memory_space<vmem>>, vector<1x128xf32>
    %98 = arith.index_cast %c13_i32 : i32 to index
    %c0_26 = arith.constant 0 : index
    %99 = vector.load %arg3[%98, %c0_26] : memref<32x128xf32, #tpu.memory_space<vmem>>, vector<1x128xf32>
    tpu.vector_store %arg3[%98, %c0_26], %97 {strides = array<i32>} : memref<32x128xf32, #tpu.memory_space<vmem>>, vector<1x128xf32>,
    %c14_i32 = arith.constant 14 : i32
    %100 = arith.addi %1, %c14_i32 : i32
    %101 = arith.index_cast %100 : i32 to index
    %102 = memref.load %arg1[%101] : memref<32xi32, #tpu.memory_space<smem>>
    %103 = arith.index_cast %102 : i32 to index
    %c0_27 = arith.constant 0 : index
    %104 = vector.load %arg2[%103, %c0_27] : memref<64x128xf32, #tpu.memory_space<vmem>>, vector<1x128xf32>
    %105 = arith.index_cast %c14_i32 : i32 to index
    %c0_28 = arith.constant 0 : index
    %106 = vector.load %arg3[%105, %c0_28] : memref<32x128xf32, #tpu.memory_space<vmem>>, vector<1x128xf32>
    tpu.vector_store %arg3[%105, %c0_28], %104 {strides = array<i32>} : memref<32x128xf32, #tpu.memory_space<vmem>>, vector<1x128xf32>,
    %c15_i32 = arith.constant 15 : i32
    %107 = arith.addi %1, %c15_i32 : i32
    %108 = arith.index_cast %107 : i32 to index
    %109 = memref.load %arg1[%108] : memref<32xi32, #tpu.memory_space<smem>>
    %110 = arith.index_cast %109 : i32 to index
    %c0_29 = arith.constant 0 : index
    %111 = vector.load %arg2[%110, %c0_29] : memref<64x128xf32, #tpu.memory_space<vmem>>, vector<1x128xf32>
    %112 = arith.index_cast %c15_i32 : i32 to index
    %c0_30 = arith.constant 0 : index
    %113 = vector.load %arg3[%112, %c0_30] : memref<32x128xf32, #tpu.memory_space<vmem>>, vector<1x128xf32>
    tpu.vector_store %arg3[%112, %c0_30], %111 {strides = array<i32>} : memref<32x128xf32, #tpu.memory_space<vmem>>, vector<1x128xf32>,
    %c16_i32 = arith.constant 16 : i32
    %114 = arith.addi %1, %c16_i32 : i32
    %115 = arith.index_cast %114 : i32 to index
    %116 = memref.load %arg1[%115] : memref<32xi32, #tpu.memory_space<smem>>
    %117 = arith.index_cast %116 : i32 to index
    %c0_31 = arith.constant 0 : index
    %118 = vector.load %arg2[%117, %c0_31] : memref<64x128xf32, #tpu.memory_space<vmem>>, vector<1x128xf32>
    %119 = arith.index_cast %c16_i32 : i32 to index
    %c0_32 = arith.constant 0 : index
    %120 = vector.load %arg3[%119, %c0_32] : memref<32x128xf32, #tpu.memory_space<vmem>>, vector<1x128xf32>
    tpu.vector_store %arg3[%119, %c0_32], %118 {strides = array<i32>} : memref<32x128xf32, #tpu.memory_space<vmem>>, vector<1x128xf32>,
    %c17_i32 = arith.constant 17 : i32
    %121 = arith.addi %1, %c17_i32 : i32
    %122 = arith.index_cast %121 : i32 to index
    %123 = memref.load %arg1[%122] : memref<32xi32, #tpu.memory_space<smem>>
    %124 = arith.index_cast %123 : i32 to index
    %c0_33 = arith.constant 0 : index
    %125 = vector.load %arg2[%124, %c0_33] : memref<64x128xf32, #tpu.memory_space<vmem>>, vector<1x128xf32>
    %126 = arith.index_cast %c17_i32 : i32 to index
    %c0_34 = arith.constant 0 : index
    %127 = vector.load %arg3[%126, %c0_34] : memref<32x128xf32, #tpu.memory_space<vmem>>, vector<1x128xf32>
    tpu.vector_store %arg3[%126, %c0_34], %125 {strides = array<i32>} : memref<32x128xf32, #tpu.memory_space<vmem>>, vector<1x128xf32>,
    %c18_i32 = arith.constant 18 : i32
    %128 = arith.addi %1, %c18_i32 : i32
    %129 = arith.index_cast %128 : i32 to index
    %130 = memref.load %arg1[%129] : memref<32xi32, #tpu.memory_space<smem>>
    %131 = arith.index_cast %130 : i32 to index
    %c0_35 = arith.constant 0 : index
    %132 = vector.load %arg2[%131, %c0_35] : memref<64x128xf32, #tpu.memory_space<vmem>>, vector<1x128xf32>
    %133 = arith.index_cast %c18_i32 : i32 to index
    %c0_36 = arith.constant 0 : index
    %134 = vector.load %arg3[%133, %c0_36] : memref<32x128xf32, #tpu.memory_space<vmem>>, vector<1x128xf32>
    tpu.vector_store %arg3[%133, %c0_36], %132 {strides = array<i32>} : memref<32x128xf32, #tpu.memory_space<vmem>>, vector<1x128xf32>,
    %c19_i32 = arith.constant 19 : i32
    %135 = arith.addi %1, %c19_i32 : i32
    %136 = arith.index_cast %135 : i32 to index
    %137 = memref.load %arg1[%136] : memref<32xi32, #tpu.memory_space<smem>>
    %138 = arith.index_cast %137 : i32 to index
    %c0_37 = arith.constant 0 : index
    %139 = vector.load %arg2[%138, %c0_37] : memref<64x128xf32, #tpu.memory_space<vmem>>, vector<1x128xf32>
    %140 = arith.index_cast %c19_i32 : i32 to index
    %c0_38 = arith.constant 0 : index
    %141 = vector.load %arg3[%140, %c0_38] : memref<32x128xf32, #tpu.memory_space<vmem>>, vector<1x128xf32>
    tpu.vector_store %arg3[%140, %c0_38], %139 {strides = array<i32>} : memref<32x128xf32, #tpu.memory_space<vmem>>, vector<1x128xf32>,
    %c20_i32 = arith.constant 20 : i32
    %142 = arith.addi %1, %c20_i32 : i32
    %143 = arith.index_cast %142 : i32 to index
    %144 = memref.load %arg1[%143] : memref<32xi32, #tpu.memory_space<smem>>
    %145 = arith.index_cast %144 : i32 to index
    %c0_39 = arith.constant 0 : index
    %146 = vector.load %arg2[%145, %c0_39] : memref<64x128xf32, #tpu.memory_space<vmem>>, vector<1x128xf32>
    %147 = arith.index_cast %c20_i32 : i32 to index
    %c0_40 = arith.constant 0 : index
    %148 = vector.load %arg3[%147, %c0_40] : memref<32x128xf32, #tpu.memory_space<vmem>>, vector<1x128xf32>
    tpu.vector_store %arg3[%147, %c0_40], %146 {strides = array<i32>} : memref<32x128xf32, #tpu.memory_space<vmem>>, vector<1x128xf32>,
    %c21_i32 = arith.constant 21 : i32
    %149 = arith.addi %1, %c21_i32 : i32
    %150 = arith.index_cast %149 : i32 to index
    %151 = memref.load %arg1[%150] : memref<32xi32, #tpu.memory_space<smem>>
    %152 = arith.index_cast %151 : i32 to index
    %c0_41 = arith.constant 0 : index
    %153 = vector.load %arg2[%152, %c0_41] : memref<64x128xf32, #tpu.memory_space<vmem>>, vector<1x128xf32>
    %154 = arith.index_cast %c21_i32 : i32 to index
    %c0_42 = arith.constant 0 : index
    %155 = vector.load %arg3[%154, %c0_42] : memref<32x128xf32, #tpu.memory_space<vmem>>, vector<1x128xf32>
    tpu.vector_store %arg3[%154, %c0_42], %153 {strides = array<i32>} : memref<32x128xf32, #tpu.memory_space<vmem>>, vector<1x128xf32>,
    %c22_i32 = arith.constant 22 : i32
    %156 = arith.addi %1, %c22_i32 : i32
    %157 = arith.index_cast %156 : i32 to index
    %158 = memref.load %arg1[%157] : memref<32xi32, #tpu.memory_space<smem>>
    %159 = arith.index_cast %158 : i32 to index
    %c0_43 = arith.constant 0 : index
    %160 = vector.load %arg2[%159, %c0_43] : memref<64x128xf32, #tpu.memory_space<vmem>>, vector<1x128xf32>
    %161 = arith.index_cast %c22_i32 : i32 to index
    %c0_44 = arith.constant 0 : index
    %162 = vector.load %arg3[%161, %c0_44] : memref<32x128xf32, #tpu.memory_space<vmem>>, vector<1x128xf32>
    tpu.vector_store %arg3[%161, %c0_44], %160 {strides = array<i32>} : memref<32x128xf32, #tpu.memory_space<vmem>>, vector<1x128xf32>,
    %c23_i32 = arith.constant 23 : i32
    %163 = arith.addi %1, %c23_i32 : i32
    %164 = arith.index_cast %163 : i32 to index
    %165 = memref.load %arg1[%164] : memref<32xi32, #tpu.memory_space<smem>>
    %166 = arith.index_cast %165 : i32 to index
    %c0_45 = arith.constant 0 : index
    %167 = vector.load %arg2[%166, %c0_45] : memref<64x128xf32, #tpu.memory_space<vmem>>, vector<1x128xf32>
    %168 = arith.index_cast %c23_i32 : i32 to index
    %c0_46 = arith.constant 0 : index
    %169 = vector.load %arg3[%168, %c0_46] : memref<32x128xf32, #tpu.memory_space<vmem>>, vector<1x128xf32>
    tpu.vector_store %arg3[%168, %c0_46], %167 {strides = array<i32>} : memref<32x128xf32, #tpu.memory_space<vmem>>, vector<1x128xf32>,
    %c24_i32 = arith.constant 24 : i32
    %170 = arith.addi %1, %c24_i32 : i32
    %171 = arith.index_cast %170 : i32 to index
    %172 = memref.load %arg1[%171] : memref<32xi32, #tpu.memory_space<smem>>
    %173 = arith.index_cast %172 : i32 to index
    %c0_47 = arith.constant 0 : index
    %174 = vector.load %arg2[%173, %c0_47] : memref<64x128xf32, #tpu.memory_space<vmem>>, vector<1x128xf32>
    %175 = arith.index_cast %c24_i32 : i32 to index
    %c0_48 = arith.constant 0 : index
    %176 = vector.load %arg3[%175, %c0_48] : memref<32x128xf32, #tpu.memory_space<vmem>>, vector<1x128xf32>
    tpu.vector_store %arg3[%175, %c0_48], %174 {strides = array<i32>} : memref<32x128xf32, #tpu.memory_space<vmem>>, vector<1x128xf32>,
    %c25_i32 = arith.constant 25 : i32
    %177 = arith.addi %1, %c25_i32 : i32
    %178 = arith.index_cast %177 : i32 to index
    %179 = memref.load %arg1[%178] : memref<32xi32, #tpu.memory_space<smem>>
    %180 = arith.index_cast %179 : i32 to index
    %c0_49 = arith.constant 0 : index
    %181 = vector.load %arg2[%180, %c0_49] : memref<64x128xf32, #tpu.memory_space<vmem>>, vector<1x128xf32>
    %182 = arith.index_cast %c25_i32 : i32 to index
    %c0_50 = arith.constant 0 : index
    %183 = vector.load %arg3[%182, %c0_50] : memref<32x128xf32, #tpu.memory_space<vmem>>, vector<1x128xf32>
    tpu.vector_store %arg3[%182, %c0_50], %181 {strides = array<i32>} : memref<32x128xf32, #tpu.memory_space<vmem>>, vector<1x128xf32>,
    %c26_i32 = arith.constant 26 : i32
    %184 = arith.addi %1, %c26_i32 : i32
    %185 = arith.index_cast %184 : i32 to index
    %186 = memref.load %arg1[%185] : memref<32xi32, #tpu.memory_space<smem>>
    %187 = arith.index_cast %186 : i32 to index
    %c0_51 = arith.constant 0 : index
    %188 = vector.load %arg2[%187, %c0_51] : memref<64x128xf32, #tpu.memory_space<vmem>>, vector<1x128xf32>
    %189 = arith.index_cast %c26_i32 : i32 to index
    %c0_52 = arith.constant 0 : index
    %190 = vector.load %arg3[%189, %c0_52] : memref<32x128xf32, #tpu.memory_space<vmem>>, vector<1x128xf32>
    tpu.vector_store %arg3[%189, %c0_52], %188 {strides = array<i32>} : memref<32x128xf32, #tpu.memory_space<vmem>>, vector<1x128xf32>,
    %c27_i32 = arith.constant 27 : i32
    %191 = arith.addi %1, %c27_i32 : i32
    %192 = arith.index_cast %191 : i32 to index
    %193 = memref.load %arg1[%192] : memref<32xi32, #tpu.memory_space<smem>>
    %194 = arith.index_cast %193 : i32 to index
    %c0_53 = arith.constant 0 : index
    %195 = vector.load %arg2[%194, %c0_53] : memref<64x128xf32, #tpu.memory_space<vmem>>, vector<1x128xf32>
    %196 = arith.index_cast %c27_i32 : i32 to index
    %c0_54 = arith.constant 0 : index
    %197 = vector.load %arg3[%196, %c0_54] : memref<32x128xf32, #tpu.memory_space<vmem>>, vector<1x128xf32>
    tpu.vector_store %arg3[%196, %c0_54], %195 {strides = array<i32>} : memref<32x128xf32, #tpu.memory_space<vmem>>, vector<1x128xf32>,
    %c28_i32 = arith.constant 28 : i32
    %198 = arith.addi %1, %c28_i32 : i32
    %199 = arith.index_cast %198 : i32 to index
    %200 = memref.load %arg1[%199] : memref<32xi32, #tpu.memory_space<smem>>
    %201 = arith.index_cast %200 : i32 to index
    %c0_55 = arith.constant 0 : index
    %202 = vector.load %arg2[%201, %c0_55] : memref<64x128xf32, #tpu.memory_space<vmem>>, vector<1x128xf32>
    %203 = arith.index_cast %c28_i32 : i32 to index
    %c0_56 = arith.constant 0 : index
    %204 = vector.load %arg3[%203, %c0_56] : memref<32x128xf32, #tpu.memory_space<vmem>>, vector<1x128xf32>
    tpu.vector_store %arg3[%203, %c0_56], %202 {strides = array<i32>} : memref<32x128xf32, #tpu.memory_space<vmem>>, vector<1x128xf32>,
    %c29_i32 = arith.constant 29 : i32
    %205 = arith.addi %1, %c29_i32 : i32
    %206 = arith.index_cast %205 : i32 to index
    %207 = memref.load %arg1[%206] : memref<32xi32, #tpu.memory_space<smem>>
    %208 = arith.index_cast %207 : i32 to index
    %c0_57 = arith.constant 0 : index
    %209 = vector.load %arg2[%208, %c0_57] : memref<64x128xf32, #tpu.memory_space<vmem>>, vector<1x128xf32>
    %210 = arith.index_cast %c29_i32 : i32 to index
    %c0_58 = arith.constant 0 : index
    %211 = vector.load %arg3[%210, %c0_58] : memref<32x128xf32, #tpu.memory_space<vmem>>, vector<1x128xf32>
    tpu.vector_store %arg3[%210, %c0_58], %209 {strides = array<i32>} : memref<32x128xf32, #tpu.memory_space<vmem>>, vector<1x128xf32>,
    %c30_i32 = arith.constant 30 : i32
    %212 = arith.addi %1, %c30_i32 : i32
    %213 = arith.index_cast %212 : i32 to index
    %214 = memref.load %arg1[%213] : memref<32xi32, #tpu.memory_space<smem>>
    %215 = arith.index_cast %214 : i32 to index
    %c0_59 = arith.constant 0 : index
    %216 = vector.load %arg2[%215, %c0_59] : memref<64x128xf32, #tpu.memory_space<vmem>>, vector<1x128xf32>
    %217 = arith.index_cast %c30_i32 : i32 to index
    %c0_60 = arith.constant 0 : index
    %218 = vector.load %arg3[%217, %c0_60] : memref<32x128xf32, #tpu.memory_space<vmem>>, vector<1x128xf32>
    tpu.vector_store %arg3[%217, %c0_60], %216 {strides = array<i32>} : memref<32x128xf32, #tpu.memory_space<vmem>>, vector<1x128xf32>,
    %c31_i32 = arith.constant 31 : i32
    %219 = arith.addi %1, %c31_i32 : i32
    %220 = arith.index_cast %219 : i32 to index
    %221 = memref.load %arg1[%220] : memref<32xi32, #tpu.memory_space<smem>>
    %222 = arith.index_cast %221 : i32 to index
    %c0_61 = arith.constant 0 : index
    %223 = vector.load %arg2[%222, %c0_61] : memref<64x128xf32, #tpu.memory_space<vmem>>, vector<1x128xf32>
    %224 = arith.index_cast %c31_i32 : i32 to index
    %c0_62 = arith.constant 0 : index
    %225 = vector.load %arg3[%224, %c0_62] : memref<32x128xf32, #tpu.memory_space<vmem>>, vector<1x128xf32>
    tpu.vector_store %arg3[%224, %c0_62], %223 {strides = array<i32>} : memref<32x128xf32, #tpu.memory_space<vmem>>, vector<1x128xf32>,
    %c32_i32_63 = arith.constant 32 : i32
    return
  }
  func.func @transform_0(%arg0: i32, %arg1: memref<32xi32, #tpu.memory_space<smem>>) -> (i32, i32) {
    %c0_i32 = arith.constant 0 : i32
    %c0_i32_0 = arith.constant 0 : i32
    %c0_i32_1 = arith.constant 0 : i32
    return %c0_i32, %c0_i32_0 : i32, i32
  }
  func.func @transform_1(%arg0: i32, %arg1: memref<32xi32, #tpu.memory_space<smem>>) -> (i32, i32) {
    %c0_i32 = arith.constant 0 : i32
    %c0_i32_0 = arith.constant 0 : i32
    return %arg0, %c0_i32 : i32, i32
  }
}

</mosaic_0001>

<bundles_post_ra>
// kernel: tpu_custom_call.1
= control target key start
LH: loop header
LB: loop body
LE: loop exit
PB: predicated region body
PF: predicated region fallthrough
CT: control target
= control target key end

     0   :  { %s423_s0 = inlined_call_operand.hbm [shape: s32[32], index: 0, kind: input, shape index: {}]   ;;  %s424_s1 = inlined_call_operand.hbm [shape: f32[64,128], index: 1, kind: input, shape index: {}]   ;;  %s425_s2 = inlined_call_operand.hbm [shape: f32[32,128], index: 2, kind: output, shape index: {}]  }
   0x1   :  { %s273_s11 = scalar_lea.hbm %s423_s0, 16 }
   0x2   :  { %p274_p0 = scmp.ne.s32.totalorder %s423_s0, %s273_s11  ;;  %p277_p1 = scmp.lt.u32.totalorder %s273_s11, %s423_s0 }
   0x4   :  { %p279_p2 = pnand %p277_p1, %p274_p0 }
   0x6   :  { %282 = shalt.err (!%p279_p2)  }
   0x7   :  { %s333_s16 = smov [#allocation3]  }
   0x8   :  { %8 = dma.hbm_to_smem %s423_s0, 16, %s333_s16, [#allocation2] }
   0x9   :  { %327 = dma.done.wait [#allocation2], 16 }
   0xa   :  { %328 = vsyncadd [#allocation2], 4294967280 }
   0xb   :  { %10 = sfence }
   0xc   :  { %11 = vsyncpa [#allocation5], 0 }
   0xd   :  { %12 = vsyncpa [#allocation6], 0  ;;  %s334_s19 = smov [#allocation4]   ;;  %s283_s23 = scalar_lea.hbm %s424_s1, 1024 }
   0xe   :  { %s18_s20 = sshll.u32 %s334_s19, 4  ;;  %p284_p3 = scmp.ne.s32.totalorder %s424_s1, %s283_s23  ;;  %s19_s20 = int_to_ptr.vmem [resolvable:$true] %s18_s20 }
   0xf   :  { %p287_p4 = scmp.lt.u32.totalorder %s283_s23, %s424_s1 }
  0x11   :  { %p289_p5 = pnand %p287_p4, %p284_p3 }
  0x13   :  { %292 = shalt.err (!%p289_p5)
}
  0x14   :  { %s293_s0 = scalar_lea.vmem %s19_s20, 1024  ;;  %p298_p7 = scmp.lt.s32.totalorder %s19_s20, %s19_s20 }
  0x15   :  { %p294_p6 = scmp.ne.s32.totalorder %s19_s20, %s293_s0  ;;  %p299_p8 = scmp.lt.s32.totalorder %s293_s0, %s293_s0 }
  0x17   :  { %p300_p9 = por %p299_p8, %p298_p7 }
  0x19   :  { %p301_p10 = pnand %p300_p9, %p294_p6 }
  0x1b   :  { %304 = shalt.err (!%p301_p10)
}
  0x1c   :  { %s335_s28 = smov 128   ;;  %s336_s29 = smov 8  }
  0x1d   :  { %24 = dma.hbm_to_vmem [thread:$0]  %s424_s1, 1024, %s19_s20, [#allocation5], %s335_s28, %s335_s28, %s336_s29  }
  0x1e   :  { %329 = dma.done.wait [#allocation5], 1024  }
  0x1f   :  { %330 = vsyncadd [#allocation5], 4294966272  ;;  %s29_s4 = sld [smem:[#allocation3]]  ;;  %s237_s5 = sld [smem:[#allocation3 + $0x1]] }
  0x20   :  { %s238_s6 = sld [smem:[#allocation3 + $0x2]]  ;;  %s239_s7 = sld [smem:[#allocation3 + $0x3]] }
  0x21   :  { %s240_s8 = sld [smem:[#allocation3 + $0x4]]  ;;  %s241_s9 = sld [smem:[#allocation3 + $0x5]] }
  0x22   :  { %s242_s10 = sld [smem:[#allocation3 + $0x6]]  ;;  %s243_s11 = sld [smem:[#allocation3 + $0x7]] }
  0x23   :  { %s380_s12 = sld [smem:[#allocation3 + $0x8]]  ;;  %s382_s13 = sld [smem:[#allocation3 + $0x9]] }
  0x24   :  { %s384_s14 = sld [smem:[#allocation3 + $0xa]]  ;;  %s386_s15 = sld [smem:[#allocation3 + $0xb]] }
  0x25   :  { %s30_s16 = scalar_lea.vmem [#allocation4], %s29_s4  ;;  %s35_s1 = scalar_lea.vmem [#allocation4], %s237_s5 }
  0x26   :  { %v31_v0 = vld [vmem:[%s30_s16] sm:$0x1]  ;;  %s40_s17 = scalar_lea.vmem [#allocation4], %s238_s6  ;;  %s45_s18 = scalar_lea.vmem [#allocation4], %s239_s7 }
  0x27   :  { %v36_v1 = vld [vmem:[%s35_s1] sm:$0x1]  ;;  %32 = vst [vmem:[#allocation7] sm:$0x1] %v31_v0  ;;  %s50_s19 = scalar_lea.vmem [#allocation4], %s240_s8  ;;  %s55_s20 = scalar_lea.vmem [#allocation4], %s241_s9 }
  0x28   :  { %37 = vst [vmem:[#allocation7 + $0x1] sm:$0x1] %v36_v1  ;;  %v41_v2 = vld [vmem:[%s40_s17] sm:$0x1]  ;;  %s60_s21 = scalar_lea.vmem [#allocation4], %s242_s10  ;;  %s65_s22 = scalar_lea.vmem [#allocation4], %s243_s11 }
  0x29   :  { %v46_v3 = vld [vmem:[%s45_s18] sm:$0x1]  ;;  %42 = vst [vmem:[#allocation7 + $0x2] sm:$0x1] %v41_v2  ;;  %s70_s23 = scalar_lea.vmem [#allocation4], %s380_s12  ;;  %s75_s24 = scalar_lea.vmem [#allocation4], %s382_s13 }
  0x2a   :  { %47 = vst [vmem:[#allocation7 + $0x3] sm:$0x1] %v46_v3  ;;  %v51_v4 = vld [vmem:[%s50_s19] sm:$0x1]  ;;  %s80_s25 = scalar_lea.vmem [#allocation4], %s384_s14  ;;  %s85_s26 = scalar_lea.vmem [#allocation4], %s386_s15 }
  0x2b   :  { %v56_v5 = vld [vmem:[%s55_s20] sm:$0x1]  ;;  %52 = vst [vmem:[#allocation7 + $0x4] sm:$0x1] %v51_v4  ;;  %s248_s27 = sld [smem:[#allocation3 + $0xc]]  ;;  %s249_s0 = sld [smem:[#allocation3 + $0xd]] }
  0x2c   :  { %57 = vst [vmem:[#allocation7 + $0x5] sm:$0x1] %v56_v5  ;;  %v61_v6 = vld [vmem:[%s60_s21] sm:$0x1]  ;;  %s250_s30 = sld [smem:[#allocation3 + $0xe]]  ;;  %s251_s3 = sld [smem:[#allocation3 + $0xf]] }
  0x2d   :  { %v66_v7 = vld [vmem:[%s65_s22] sm:$0x1]  ;;  %62 = vst [vmem:[#allocation7 + $0x6] sm:$0x1] %v61_v6  ;;  %s252_s4 = sld [smem:[#allocation3 + $0x10]]  ;;  %s253_s5 = sld [smem:[#allocation3 + $0x11]] }
  0x2e   :  { %67 = vst [vmem:[#allocation7 + $0x7] sm:$0x1] %v66_v7  ;;  %v71_v8 = vld [vmem:[%s70_s23] sm:$0x1]  ;;  %s254_s6 = sld [smem:[#allocation3 + $0x12]]  ;;  %s255_s7 = sld [smem:[#allocation3 + $0x13]] }
  0x2f   :  { %v76_v9 = vld [vmem:[%s75_s24] sm:$0x1]  ;;  %72 = vst [vmem:[#allocation7 + $0x8] sm:$0x1] %v71_v8  ;;  %s256_s8 = sld [smem:[#allocation3 + $0x14]]  ;;  %s392_s9 = sld [smem:[#allocation3 + $0x15]] }
  0x30   :  { %77 = vst [vmem:[#allocation7 + $0x9] sm:$0x1] %v76_v9  ;;  %v81_v10 = vld [vmem:[%s80_s25] sm:$0x1]  ;;  %s394_s10 = sld [smem:[#allocation3 + $0x16]]  ;;  %s396_s11 = sld [smem:[#allocation3 + $0x17]] }
  0x31   :  { %v86_v11 = vld [vmem:[%s85_s26] sm:$0x1]  ;;  %82 = vst [vmem:[#allocation7 + $0xa] sm:$0x1] %v81_v10  ;;  %s90_s12 = scalar_lea.vmem [#allocation4], %s248_s27  ;;  %s95_s13 = scalar_lea.vmem [#allocation4], %s249_s0 }
  0x32   :  { %87 = vst [vmem:[#allocation7 + $0xb] sm:$0x1] %v86_v11  ;;  %v91_v12 = vld [vmem:[%s90_s12] sm:$0x1]  ;;  %s100_s14 = scalar_lea.vmem [#allocation4], %s250_s30  ;;  %s105_s15 = scalar_lea.vmem [#allocation4], %s251_s3 }
  0x33   :  { %92 = vst [vmem:[#allocation7 + $0xc] sm:$0x1] %v91_v12  ;;  %v96_v13 = vld [vmem:[%s95_s13] sm:$0x1]  ;;  %s110_s16 = scalar_lea.vmem [#allocation4], %s252_s4  ;;  %s115_s1 = scalar_lea.vmem [#allocation4], %s253_s5 }
  0x34   :  { %v101_v14 = vld [vmem:[%s100_s14] sm:$0x1]  ;;  %97 = vst [vmem:[#allocation7 + $0xd] sm:$0x1] %v96_v13  ;;  %s120_s17 = scalar_lea.vmem [#allocation4], %s254_s6  ;;  %s125_s18 = scalar_lea.vmem [#allocation4], %s255_s7 }
  0x35   :  { %102 = vst [vmem:[#allocation7 + $0xe] sm:$0x1] %v101_v14  ;;  %v106_v15 = vld [vmem:[%s105_s15] sm:$0x1]  ;;  %s130_s19 = scalar_lea.vmem [#allocation4], %s256_s8  ;;  %s135_s20 = scalar_lea.vmem [#allocation4], %s392_s9 }
  0x36   :  { %v111_v16 = vld [vmem:[%s110_s16] sm:$0x1]  ;;  %107 = vst [vmem:[#allocation7 + $0xf] sm:$0x1] %v106_v15  ;;  %s140_s21 = scalar_lea.vmem [#allocation4], %s394_s10  ;;  %s337_s22 = smov [#allocation7]  }
  0x37   :  { %112 = vst [vmem:[#allocation7 + $0x10] sm:$0x1] %v111_v16  ;;  %v116_v17 = vld [vmem:[%s115_s1] sm:$0x1]  ;;  %s193_s23 = sshll.u32 %s337_s22, 4  ;;  %s145_s24 = scalar_lea.vmem [#allocation4], %s396_s11  ;;  %s401_s23 = int_to_ptr.vmem [resolvable:$true] %s193_s23 }
  0x38   :  { %v121_v18 = vld [vmem:[%s120_s17] sm:$0x1]  ;;  %117 = vst [vmem:[#allocation7 + $0x11] sm:$0x1] %v116_v17  ;;  %s260_s25 = sld [smem:[#allocation3 + $0x18]]  ;;  %s261_s26 = sld [smem:[#allocation3 + $0x19]] }
  0x39   :  { %122 = vst [vmem:[#allocation7 + $0x12] sm:$0x1] %v121_v18  ;;  %v126_v19 = vld [vmem:[%s125_s18] sm:$0x1]  ;;  %s262_s27 = sld [smem:[#allocation3 + $0x1a]]  ;;  %s263_s0 = sld [smem:[#allocation3 + $0x1b]] }
  0x3a   :  { %v131_v20 = vld [vmem:[%s130_s19] sm:$0x1]  ;;  %127 = vst [vmem:[#allocation7 + $0x13] sm:$0x1] %v126_v19  ;;  %s264_s30 = sld [smem:[#allocation3 + $0x1c]]  ;;  %s265_s3 = sld [smem:[#allocation3 + $0x1d]] }
  0x3b   :  { %132 = vst [vmem:[#allocation7 + $0x14] sm:$0x1] %v131_v20  ;;  %v136_v21 = vld [vmem:[%s135_s20] sm:$0x1]  ;;  %s266_s4 = sld [smem:[#allocation3 + $0x1e]]  ;;  %s267_s5 = sld [smem:[#allocation3 + $0x1f]] }
  0x3c   :  { %v141_v22 = vld [vmem:[%s140_s21] sm:$0x1]  ;;  %137 = vst [vmem:[#allocation7 + $0x15] sm:$0x1] %v136_v21  ;;  %s305_s14 = scalar_lea.vmem %s401_s23, 512  ;;  %p310_p12 = scmp.lt.s32.totalorder %s401_s23, %s401_s23 }
  0x3d   :  { %142 = vst [vmem:[#allocation7 + $0x16] sm:$0x1] %v141_v22  ;;  %v146_v23 = vld [vmem:[%s145_s24] sm:$0x1]  ;;  %p306_p11 = scmp.ne.s32.totalorder %s401_s23, %s305_s14  ;;  %p311_p13 = scmp.lt.s32.totalorder %s305_s14, %s305_s14 }
  0x3e   :  { %147 = vst [vmem:[#allocation7 + $0x17] sm:$0x1] %v146_v23  ;;  %s150_s6 = scalar_lea.vmem [#allocation4], %s260_s25  ;;  %s155_s7 = scalar_lea.vmem [#allocation4], %s261_s26 }
  0x3f   :  { %v151_v24 = vld [vmem:[%s150_s6] sm:$0x1]  ;;  %s160_s8 = scalar_lea.vmem [#allocation4], %s262_s27  ;;  %s165_s9 = scalar_lea.vmem [#allocation4], %s263_s0 }
  0x40   :  { %v156_v25 = vld [vmem:[%s155_s7] sm:$0x1]  ;;  %152 = vst [vmem:[#allocation7 + $0x18] sm:$0x1] %v151_v24  ;;  %s170_s10 = scalar_lea.vmem [#allocation4], %s264_s30  ;;  %s175_s11 = scalar_lea.vmem [#allocation4], %s265_s3 }
  0x41   :  { %157 = vst [vmem:[#allocation7 + $0x19] sm:$0x1] %v156_v25  ;;  %v161_v26 = vld [vmem:[%s160_s8] sm:$0x1]  ;;  %s180_s12 = scalar_lea.vmem [#allocation4], %s266_s4  ;;  %s185_s13 = scalar_lea.vmem [#allocation4], %s267_s5 }
  0x42   :  { %v166_v27 = vld [vmem:[%s165_s9] sm:$0x1]  ;;  %162 = vst [vmem:[#allocation7 + $0x1a] sm:$0x1] %v161_v26  ;;  %p312_p0 = por %p311_p13, %p310_p12 }
  0x43   :  { %167 = vst [vmem:[#allocation7 + $0x1b] sm:$0x1] %v166_v27  ;;  %v171_v28 = vld [vmem:[%s170_s10] sm:$0x1] }
  0x44   :  { %v176_v29 = vld [vmem:[%s175_s11] sm:$0x1]  ;;  %172 = vst [vmem:[#allocation7 + $0x1c] sm:$0x1] %v171_v28  ;;  %p313_p1 = pnand %p312_p0, %p306_p11 }
  0x45   :  { %177 = vst [vmem:[#allocation7 + $0x1d] sm:$0x1] %v176_v29  ;;  %v181_v30 = vld [vmem:[%s180_s12] sm:$0x1] }
  0x46   :  { %v186_v31 = vld [vmem:[%s185_s13] sm:$0x1]  ;;  %182 = vst [vmem:[#allocation7 + $0x1e] sm:$0x1] %v181_v30 }
  0x47   :  { %187 = vst [vmem:[#allocation7 + $0x1f] sm:$0x1] %v186_v31 }
  0x48   :  { %316 = shalt.err (!%p313_p1)
}
  0x49   :  { %s317_s1 = scalar_lea.hbm %s425_s2, 512 }
  0x4a   :  { %p318_p2 = scmp.ne.s32.totalorder %s425_s2, %s317_s1  ;;  %p321_p3 = scmp.lt.u32.totalorder %s317_s1, %s425_s2 }
  0x4c   :  { %p323_p4 = pnand %p321_p3, %p318_p2 }
  0x4e   :  { %326 = shalt.err (!%p323_p4)
}
  0x4f   :  { %199 = dma.vmem_to_hbm [thread:$0]  %s401_s23, 512, %s425_s2, [#allocation6], %s335_s28, %s335_s28, %s336_s29  }
  0x50   :  { %331 = dma.done.wait [#allocation6], 512  }
  0x51   :  { %332 = vsyncadd [#allocation6], 4294966784 }
  0x52   :  { %203 = vsyncpa [#allocation5], 1 }
  0x53   :  { %204 = vsyncpa [#allocation6], 1 }

</bundles_post_ra>
